<compile_context>
chip_gen: v6e
topology: v6e:2x2x1
jax: 0.10.0
libtpu: 0.0.40
codegen_flags: <defaults>
</compile_context>

<pallas_src>
import jax
import jax.numpy as jnp
from jax.experimental import pallas as pl
from jax.experimental.pallas import tpu as pltpu


def _fast_recip(d):
    # EUP approximate reciprocal (separate VLIW slot) + one Newton step.
    r = pl.reciprocal(d, approx=True)
    return r * (2.0 - d * r)


def _attn_pool_kernel(x_ref, w1_ref, b1_ref, w2_ref, b2_ref, agg_ref, sc_ref):
    Bt, N, F = x_ref.shape
    H = w1_ref.shape[1]

    x = x_ref[...]                                            # (Bt, N, F), input dtype

    # attention_fc + ReLU: one big (Bt*N, F) @ (F, H) MXU matmul, f32 accumulate.
    h = jnp.dot(x.reshape(Bt * N, F), w1_ref[...],
                preferred_element_type=jnp.float32)           # (Bt*N, H) f32
    h = jnp.maximum(h + b1_ref[...].astype(jnp.float32), 0.0)

    # attention_weights + sigmoid: lane reduction instead of an (*, 1) MXU matmul.
    logits = jnp.sum(h * w2_ref[...].astype(jnp.float32), axis=-1)       # (Bt*N,)
    logits = logits.reshape(Bt, N) + b2_ref[...].astype(jnp.float32)     # (Bt, N)
    s = jax.nn.sigmoid(logits)                                           # (Bt, N)

    # softmax over the patch axis (lane axis), max-stabilized.
    s = s - jnp.max(s, axis=-1, keepdims=True)
    e = jnp.exp(s)
    p = e * _fast_recip(jnp.sum(e, axis=-1, keepdims=True))              # (Bt, N)

    # weighted sum over patches (f32 accumulation on the VPU; sublane reduce).
    agg = jnp.sum(x.astype(jnp.float32) * p[:, :, None], axis=1)         # (Bt, F)

    agg_ref[...] = agg.astype(agg_ref.dtype)
    sc_ref[...] = p.astype(sc_ref.dtype)                                 # lane-dense (Bt, N)


def attention_pooling(x, w1, b1, w2, b2, *, block_b=64):
    """x: (B, N, F). w1: (F, H), b1: (H,), w2: (H, 1), b2: (1,).

    Returns (agg (B, F), scores (B, N, 1)) matching the PyTorch forward.
    `block_b` = batch rows per grid step (multiple of 8 when it tiles B).
    """
    B, N, F = x.shape
    H = w1.shape[1]

    if B <= block_b:
        Bt, Bp = B, B                      # single step, block == full array (always legal)
    else:
        Bt = block_b                       # keep a multiple of 8 for (8,128)-friendly blocks
        Bp = ((B + Bt - 1) // Bt) * Bt

    xp = x if Bp == B else jnp.pad(x, ((0, Bp - B), (0, 0), (0, 0)))

    b1_2d = b1.reshape(1, H)
    w2_row = w2.reshape(1, H)              # (H, 1) -> (1, H) for the lane reduction
    b2_2d = b2.reshape(1, 1)

    grid_spec = pltpu.PrefetchScalarGridSpec(
        num_scalar_prefetch=0,
        grid=(Bp // Bt,),
        in_specs=[
            pl.BlockSpec((Bt, N, F), lambda b: (b, 0, 0)),   # Bt batch rows per step
            pl.BlockSpec((F, H), lambda b: (0, 0)),          # W1 (shared, stays resident)
            pl.BlockSpec((1, H), lambda b: (0, 0)),          # b1
            pl.BlockSpec((1, H), lambda b: (0, 0)),          # W2 as a row
            pl.BlockSpec((1, 1), lambda b: (0, 0)),          # b2
        ],
        out_specs=[
            pl.BlockSpec((Bt, F), lambda b: (b, 0)),         # aggregated features
            pl.BlockSpec((Bt, N), lambda b: (b, 0)),         # lane-dense attention scores
        ],
    )

    agg, scores2d = pl.pallas_call(
        _attn_pool_kernel,
        grid_spec=grid_spec,
        out_shape=(
            jax.ShapeDtypeStruct((Bp, F), x.dtype),
            jax.ShapeDtypeStruct((Bp, N), x.dtype),
        ),
        compiler_params=pltpu.CompilerParams(
            dimension_semantics=("parallel",),               # megacore sharding on v7x
        ),
    )(xp, w1, b1_2d, w2_row, b2_2d)

    if Bp != B:
        agg = agg[:B]
        scores2d = scores2d[:B]
    return agg, scores2d.reshape(B, N, 1)


def attention_pooling_ref(x, w1, b1, w2, b2):
    """Pure-JAX reference matching the PyTorch forward."""
    h = jax.nn.relu(jnp.einsum("bnf,fh->bnh", x, w1) + b1)
    s = jax.nn.sigmoid(jnp.einsum("bnh,ho->bno", h, w2) + b2)
    p = jax.nn.softmax(s, axis=1)
    agg = jnp.sum(x * p, axis=1)
    return agg, p


if __name__ == "__main__":
    key = jax.random.PRNGKey(0)
    kx, k1, k2, k3, k4, kx2, kx3 = jax.random.split(key, 7)

    # Small shapes consistent with the module: batch, num_patches, input_dim, hidden_dim.
    B, N, F, H = 2, 8, 32, 32
    x = jax.random.normal(kx, (B, N, F), dtype=jnp.float32)
    w1 = jax.random.normal(k1, (F, H), dtype=jnp.float32) * 0.1
    b1 = jax.random.normal(k2, (H,), dtype=jnp.float32) * 0.1
    w2 = jax.random.normal(k3, (H, 1), dtype=jnp.float32) * 0.1
    b2 = jax.random.normal(k4, (1,), dtype=jnp.float32) * 0.1

    agg, scores = attention_pooling(x, w1, b1, w2, b2)
    jax.block_until_ready((agg, scores))
    agg_ref, scores_ref = attention_pooling_ref(x, w1, b1, w2, b2)
    assert jnp.allclose(agg, agg_ref, atol=1e-5, rtol=1e-5), "aggregated mismatch"
    assert jnp.allclose(scores, scores_ref, atol=1e-5, rtol=1e-5), "scores mismatch"

    # Second config: exercise the batch-tiled multi-step grid path (Bt=8, grid=2).
    B2 = 16
    x2 = jax.random.normal(kx2, (B2, N, F), dtype=jnp.float32)
    agg2, scores2 = attention_pooling(x2, w1, b1, w2, b2, block_b=8)
    jax.block_until_ready((agg2, scores2))
    agg2_ref, scores2_ref = attention_pooling_ref(x2, w1, b1, w2, b2)
    assert jnp.allclose(agg2, agg2_ref, atol=1e-5, rtol=1e-5), "tiled aggregated mismatch"
    assert jnp.allclose(scores2, scores2_ref, atol=1e-5, rtol=1e-5), "tiled scores mismatch"

    # Third config: non-multiple batch exercises the padding + slice path (B=10, Bt=8).
    B3 = 10
    x3 = jax.random.normal(kx3, (B3, N, F), dtype=jnp.float32)
    agg3, scores3 = attention_pooling(x3, w1, b1, w2, b2, block_b=8)
    jax.block_until_ready((agg3, scores3))
    agg3_ref, scores3_ref = attention_pooling_ref(x3, w1, b1, w2, b2)
    assert jnp.allclose(agg3, agg3_ref, atol=1e-5, rtol=1e-5), "padded aggregated mismatch"
    assert jnp.allclose(scores3, scores3_ref, atol=1e-5, rtol=1e-5), "padded scores mismatch"

    print("KERNEL_OK")
</pallas_src>

<mosaic_0001>
module attributes {stable_mosaic.version = 11 : i64} {
  func.func @_attn_pool_kernel(%arg0: i32, %arg1: memref<2x8x32xf32, #tpu.memory_space<vmem>>, %arg2: memref<32x32xf32, #tpu.memory_space<vmem>>, %arg3: memref<1x32xf32, #tpu.memory_space<vmem>>, %arg4: memref<1x32xf32, #tpu.memory_space<vmem>>, %arg5: memref<1x1xf32, #tpu.memory_space<vmem>>, %arg6: memref<2x32xf32, #tpu.memory_space<vmem>>, %arg7: memref<2x8xf32, #tpu.memory_space<vmem>>) attributes {dimension_semantics = [#tpu.dimension_semantics<parallel>], iteration_bounds = array<i64: 1>, scalar_prefetch = 0 : i64, scratch_operands = 0 : i64, tpu.core_type = #tpu.core_type<tc>, window_params = [{transform_indices = @transform_0, window_bounds = array<i64: 2, 8, 32>}, {pipeline_mode = #tpu.pipeline_mode<synchronous>, transform_indices = @transform_1, window_bounds = array<i64: 32, 32>}, {pipeline_mode = #tpu.pipeline_mode<synchronous>, transform_indices = @transform_2, window_bounds = array<i64: 1, 32>}, {pipeline_mode = #tpu.pipeline_mode<synchronous>, transform_indices = @transform_3, window_bounds = array<i64: 1, 32>}, {pipeline_mode = #tpu.pipeline_mode<synchronous>, transform_indices = @transform_4, window_bounds = array<i64: 1, 1>}, {transform_indices = @transform_5, window_bounds = array<i64: 2, 32>}, {transform_indices = @transform_6, window_bounds = array<i64: 2, 8>}]} {
    %c0 = arith.constant 0 : index
    %c0_0 = arith.constant 0 : index
    %c0_1 = arith.constant 0 : index
    %0 = vector.load %arg1[%c0, %c0_0, %c0_1] : memref<2x8x32xf32, #tpu.memory_space<vmem>>, vector<2x8x32xf32>
    %1 = vector.shape_cast %0 : vector<2x8x32xf32> to vector<16x32xf32>
    %c0_2 = arith.constant 0 : index
    %c0_3 = arith.constant 0 : index
    %2 = vector.load %arg2[%c0_2, %c0_3] : memref<32x32xf32, #tpu.memory_space<vmem>>, vector<32x32xf32>
    %cst = arith.constant dense<0.000000e+00> : vector<16x32xf32>
    %3 = tpu.matmul %1, %2, %cst {dimension_numbers = #tpu.dot_dimension_numbers<[1], [0], [0], [1], [0, 0, 1, 1], [], []>} : vector<16x32xf32>, vector<32x32xf32>, vector<16x32xf32> -> vector<16x32xf32>
    %c0_4 = arith.constant 0 : index
    %c0_5 = arith.constant 0 : index
    %4 = vector.load %arg3[%c0_4, %c0_5] : memref<1x32xf32, #tpu.memory_space<vmem>>, vector<1x32xf32>
    %5 = vector.broadcast %4 : vector<1x32xf32> to vector<16x32xf32>
    %6 = arith.addf %3, %5 : vector<16x32xf32>
    %cst_6 = arith.constant 0.000000e+00 : f32
    %7 = vector.broadcast %cst_6 : f32 to vector<16x32xf32>
    %8 = arith.maximumf %6, %7 : vector<16x32xf32>
    %c0_7 = arith.constant 0 : index
    %c0_8 = arith.constant 0 : index
    %9 = vector.load %arg4[%c0_7, %c0_8] : memref<1x32xf32, #tpu.memory_space<vmem>>, vector<1x32xf32>
    %10 = vector.broadcast %9 : vector<1x32xf32> to vector<16x32xf32>
    %11 = arith.mulf %8, %10 : vector<16x32xf32>
    %cst_9 = arith.constant dense<0.000000e+00> : vector<16xf32>
    %12 = vector.multi_reduction <add>, %11, %cst_9 [1] : vector<16x32xf32> to vector<16xf32>
    %13 = vector.shape_cast %12 : vector<16xf32> to vector<2x8xf32>
    %c0_10 = arith.constant 0 : index
    %c0_11 = arith.constant 0 : index
    %14 = vector.load %arg5[%c0_10, %c0_11] : memref<1x1xf32, #tpu.memory_space<vmem>>, vector<1x1xf32>
    %15 = vector.broadcast %14 : vector<1x1xf32> to vector<2x8xf32>
    %16 = arith.addf %13, %15 : vector<2x8xf32>
    %17 = arith.negf %16 : vector<2x8xf32>
    %18 = math.exp %17 : vector<2x8xf32>
    %cst_12 = arith.constant 1.000000e+00 : f32
    %19 = vector.broadcast %cst_12 : f32 to vector<2x8xf32>
    %20 = arith.addf %19, %18 : vector<2x8xf32>
    %21 = arith.divf %19, %20 : vector<2x8xf32>
    %cst_13 = arith.constant dense<0xFF800000> : vector<2xf32>
    %22 = vector.multi_reduction <maximumf>, %21, %cst_13 [1] : vector<2x8xf32> to vector<2xf32>
    %23 = vector.shape_cast %22 : vector<2xf32> to vector<2x1xf32>
    %24 = vector.broadcast %23 : vector<2x1xf32> to vector<2x8xf32>
    %25 = arith.subf %21, %24 : vector<2x8xf32>
    %26 = math.exp %25 : vector<2x8xf32>
    %cst_14 = arith.constant dense<0.000000e+00> : vector<2xf32>
    %27 = vector.multi_reduction <add>, %26, %cst_14 [1] : vector<2x8xf32> to vector<2xf32>
    %28 = vector.shape_cast %27 : vector<2xf32> to vector<2x1xf32>
    %29 = tpu.reciprocal %28 {approx = true} : vector<2x1xf32> -> vector<2x1xf32>
    %30 = arith.mulf %28, %29 : vector<2x1xf32>
    %cst_15 = arith.constant 2.000000e+00 : f32
    %31 = vector.broadcast %cst_15 : f32 to vector<2x1xf32>
    %32 = arith.subf %31, %30 : vector<2x1xf32>
    %33 = arith.mulf %29, %32 : vector<2x1xf32>
    %34 = vector.broadcast %33 : vector<2x1xf32> to vector<2x8xf32>
    %35 = arith.mulf %26, %34 : vector<2x8xf32>
    %36 = vector.shape_cast %35 : vector<2x8xf32> to vector<2x8x1xf32>
    %37 = vector.broadcast %36 : vector<2x8x1xf32> to vector<2x8x32xf32>
    %38 = arith.mulf %0, %37 : vector<2x8x32xf32>
    %cst_16 = arith.constant dense<0.000000e+00> : vector<2x32xf32>
    %39 = vector.multi_reduction <add>, %38, %cst_16 [1] : vector<2x8x32xf32> to vector<2x32xf32>
    %c0_17 = arith.constant 0 : index
    %c0_18 = arith.constant 0 : index
    %40 = vector.load %arg6[%c0_17, %c0_18] : memref<2x32xf32, #tpu.memory_space<vmem>>, vector<2x32xf32>
    tpu.vector_store %arg6[%c0_17, %c0_18], %39 {strides = array<i32>} : memref<2x32xf32, #tpu.memory_space<vmem>>, vector<2x32xf32>,
    %c0_19 = arith.constant 0 : index
    %c0_20 = arith.constant 0 : index
    %41 = vector.load %arg7[%c0_19, %c0_20] : memref<2x8xf32, #tpu.memory_space<vmem>>, vector<2x8xf32>
    tpu.vector_store %arg7[%c0_19, %c0_20], %35 {strides = array<i32>} : memref<2x8xf32, #tpu.memory_space<vmem>>, vector<2x8xf32>,
    return
  }
  func.func @transform_0(%arg0: i32) -> (i32, i32, i32) {
    %c0_i32 = arith.constant 0 : i32
    %c0_i32_0 = arith.constant 0 : i32
    %c0_i32_1 = arith.constant 0 : i32
    return %arg0, %c0_i32, %c0_i32_0 : i32, i32, i32
  }
  func.func @transform_1(%arg0: i32) -> (i32, i32) {
    %c0_i32 = arith.constant 0 : i32
    %c0_i32_0 = arith.constant 0 : i32
    %c0_i32_1 = arith.constant 0 : i32
    return %c0_i32, %c0_i32_0 : i32, i32
  }
  func.func @transform_2(%arg0: i32) -> (i32, i32) {
    %c0_i32 = arith.constant 0 : i32
    %c0_i32_0 = arith.constant 0 : i32
    %c0_i32_1 = arith.constant 0 : i32
    return %c0_i32, %c0_i32_0 : i32, i32
  }
  func.func @transform_3(%arg0: i32) -> (i32, i32) {
    %c0_i32 = arith.constant 0 : i32
    %c0_i32_0 = arith.constant 0 : i32
    %c0_i32_1 = arith.constant 0 : i32
    return %c0_i32, %c0_i32_0 : i32, i32
  }
  func.func @transform_4(%arg0: i32) -> (i32, i32) {
    %c0_i32 = arith.constant 0 : i32
    %c0_i32_0 = arith.constant 0 : i32
    %c0_i32_1 = arith.constant 0 : i32
    return %c0_i32, %c0_i32_0 : i32, i32
  }
  func.func @transform_5(%arg0: i32) -> (i32, i32) {
    %c0_i32 = arith.constant 0 : i32
    %c0_i32_0 = arith.constant 0 : i32
    return %arg0, %c0_i32 : i32, i32
  }
  func.func @transform_6(%arg0: i32) -> (i32, i32) {
    %c0_i32 = arith.constant 0 : i32
    %c0_i32_0 = arith.constant 0 : i32
    return %arg0, %c0_i32 : i32, i32
  }
}

</mosaic_0001>

<bundles_post_ra>
// kernel: tpu_custom_call.1
= control target key start
LH: loop header
LB: loop body
LE: loop exit
PB: predicated region body
PF: predicated region fallthrough
CT: control target
= control target key end

     0   :  { %s556_s0 = inlined_call_operand.hbm [shape: f32[2,8,32], index: 0, kind: input, shape index: {}]   ;;  %s557_s1 = inlined_call_operand.hbm [shape: f32[32,32], index: 1, kind: input, shape index: {}]   ;;  %s558_s2 = inlined_call_operand.vmem [shape: f32[1,32], index: 2, kind: input, shape index: {}]   ;;  %s559_s3 = inlined_call_operand.vmem [shape: f32[1,32], index: 3, kind: input, shape index: {}]   ;;  %s560_s4 = inlined_call_operand.<no memory space> [shape: f32[1,1], index: 4, kind: input, shape index: {}]   ;;  %s561_s5 = inlined_call_operand.hbm [shape: f32[2,32], index: 5, kind: output, shape index: {0}]   ;;  %s562_s6 = inlined_call_operand.hbm [shape: f32[2,8], index: 6, kind: output, shape index: {1}]  }
   0x1   :  { %v12_v0 = vstv %s560_s4 }
   0x2   :  { %13 = vst [vmem:[#allocation2] sm:$0x1] %v12_v0 }
   0x3   :  { %14 = vsyncpa [#allocation4], 0 }
   0x4   :  { %15 = vsyncpa [#allocation7], 0 }
   0x5   :  { %16 = vsyncpa [#allocation5], 0 }
   0x6   :  { %17 = vsyncpa [#allocation10], 0  ;;  %s472_s23 = smov [#allocation3]  }
   0x7   :  { %s23_s24 = sshll.u32 %s472_s23, 4  ;;  %s24_s24 = int_to_ptr.vmem [resolvable:$true] %s23_s24 }
   0x8   :  { %s392_s25 = scalar_lea.vmem %s24_s24, 256  ;;  %p397_p1 = scmp.lt.s32.totalorder %s24_s24, %s24_s24 }
   0x9   :  { %p393_p0 = scmp.ne.s32.totalorder %s24_s24, %s392_s25  ;;  %p398_p2 = scmp.lt.s32.totalorder %s392_s25, %s392_s25 }
   0xb   :  { %p399_p3 = por %p398_p2, %p397_p1 }
   0xd   :  { %p400_p4 = pnand %p399_p3, %p393_p0 }
   0xf   :  { %403 = shalt.err (!%p400_p4)
}
  0x10   :  { %s473_s26 = smov 128   ;;  %s474_s27 = smov 8  }
  0x11   :  { %29 = dma.hbm_to_vmem [thread:$0]  %s556_s0, 256, %s24_s24, [#allocation4], %s473_s26, %s473_s26, %s474_s27  }
  0x12   :  { %s475_s4 = smov [#allocation6]  }
  0x13   :  { %s35_s30 = sshll.u32 %s475_s4, 4  ;;  %s36_s30 = int_to_ptr.vmem [resolvable:$true] %s35_s30 }
  0x14   :  { %s412_s7 = scalar_lea.vmem %s36_s30, 512  ;;  %p417_p6 = scmp.lt.s32.totalorder %s36_s30, %s36_s30 }
  0x15   :  { %p413_p5 = scmp.ne.s32.totalorder %s36_s30, %s412_s7  ;;  %p418_p7 = scmp.lt.s32.totalorder %s412_s7, %s412_s7 }
  0x17   :  { %p419_p8 = por %p418_p7, %p417_p6 }
  0x19   :  { %p420_p9 = pnand %p419_p8, %p413_p5 }
  0x1b   :  { %423 = shalt.err (!%p420_p9)
}
  0x1c   :  { %41 = dma.hbm_to_vmem [thread:$0]  %s557_s1, 512, %s36_s30, [#allocation7], %s473_s26, %s473_s26, %s474_s27  }
  0x1d   :  { %464 = dma.done.wait [#allocation4], 256  }
  0x1e   :  { %465 = vsyncadd [#allocation4], 4294967040 }
  0x1f   :  { %466 = dma.done.wait [#allocation7], 512  }
  0x20   :  { %467 = vsyncadd [#allocation7], 4294966784  ;;  %vm67_vm0 = vcmask 261120   ;;  %v59_v1 = vld [vmem:[#allocation6 + $0x18] sm:$0xff]  ;;  %v58_v2 = vld [vmem:[#allocation6 + $0x10] sm:$0xff]  ;;  %v476_v8 = vmov 0   ;;  %v192_v32 = vlaneseq }
  0x21   :  { %350 = vmatprep.subr.mxu0 %v59_v1  ;;  %v523_v3 = vld [vmem:[#allocation3] sm:$0xff]  ;;  %v57_v4 = vld [vmem:[#allocation6 + $0x8] sm:$0xff]  ;;  %v56_v5 = vld [vmem:[#allocation6] sm:$0xff]  ;;  %368 = vset.pattern.permute.xlu1 %v476_v8  ;;  %vm202_vm1 = vcmask 1041409   ;;  %vm205_vm2 = vcmask 58368  }
  0x22   :  { %351 = vmatpush3.msra.mxu0 %v59_v1  ;;  %358 = vmatprep.mubr.msk.f32.mxu0 %vm67_vm0, %v523_v3  ;;  %v527_v6 = vld [vmem:[#allocation3 + $0x8] sm:$0xff]  ;;  %v341_v7 = vld [vmem:[#allocation2] ss:$0 sm:$0xff]  ;;  %v193_v33 = vand.u32 127, %v192_v32  ;;  %v195_v34 = vshrl.u32 %v192_v32, 7 }
  0x23   :  { %352 = vmatprep.subr.mxu0 %v58_v2  ;;  %369 = vset.pattern.permute.xlu0 %v476_v8  ;;  %v337_v9 = vld [vmem:[%s558_s2] ss:$0 sm:$0xff]  ;;  %s477_s2 = smov [#allocation9]  }
  0x24   :  { %353 = vmatpush3.msra.mxu0 %v58_v2  ;;  %173 = vperm.xlu1 %368, %v341_v7   ;;  %v340_v16 = vld [vmem:[%s559_s3] ss:$0 sm:$0xff]  ;;  %v196_v35 = vsub.s32 %v193_v33, %v195_v34  ;;  %v212_v42 = vsub.s32 0, %v195_v34  ;;  %v216_v43 = vsub.s32 1, %v195_v34  ;;  %s323_s3 = sshll.u32 %s477_s2, 4  ;;  %s324_s3 = int_to_ptr.vmem [resolvable:$true] %s323_s3 }
  0x25   :  { %354 = vmatprep.subr.mxu0 %v57_v4  ;;  %s424_s12 = scalar_lea.vmem %s324_s3, 32  ;;  %p429_p11 = scmp.lt.s32.totalorder %s324_s3, %s324_s3 }
  0x26   :  { %355 = vmatpush3.msra.mxu0 %v57_v4  ;;  %p425_p10 = scmp.ne.s32.totalorder %s324_s3, %s424_s12  ;;  %p430_p12 = scmp.lt.s32.totalorder %s424_s12, %s424_s12 }
  0x27   :  { %356 = vmatprep.subr.mxu0 %v56_v5 }
  0x28   :  { %357 = vmatpush3.msra.mxu0 %v56_v5  ;;  %p431_p13 = por %p430_p12, %p429_p11 }
  0x29   :  { %359 = vmatmul.mubr.msk.f32.vlgmr.msra.gmra.mxu0 %vm67_vm0, %v527_v6 }
  0x2a   :  { %p432_p0 = pnand %p431_p13, %p425_p10 }
  0x9f   :  { %v174_v21 = vpop.permute.xlu1 %173 }
  0xe9   :  { %v360_v10 = vpop.f32.mrf.mxu0 }
  0xea   :  { %v146_v11 = vadd.f32 %v360_v10, %v337_v9 }
  0xeb   :  { %v140_v12 = vpop.f32.mrf.mxu0 }
  0xec   :  { %v141_v13 = vadd.f32 %v337_v9, %v140_v12  ;;  %v150_v14 = vmax.f32 %v146_v11, 0.0 }
  0xee   :  { %v149_v15 = vmax.f32 %v141_v13, 0.0  ;;  %v159_v19 = vmul.f32 %v340_v16, %v150_v14 }
  0xf0   :  { %v158_v17 = vmul.f32 %v340_v16, %v149_v15  ;;  %v163_v20 = vsel %vm67_vm0, %v159_v19, 0.0 }
  0xf2   :  { %v160_v18 = vsel %vm67_vm0, %v158_v17, 0.0 }
  0xf3   :  { %161 = vadd.xlane.f32.xlu0 %v160_v18 }
  0xf7   :  { %164 = vadd.xlane.f32.xlu0 %v163_v20 }
 0x17c   :  { %v162_v22 = vpop.xlane.xlu0 %161 }
 0x17d   :  { %v176_v23 = vadd.f32 %v174_v21, %v162_v22 }
 0x17f   :  { %v342_v24 = vmul.f32 -1.442695, %v176_v23 }
 0x180   :  { %v165_v25 = vpop.xlane.xlu0 %164 }
 0x181   :  { %370 = vpow2.f32 %v342_v24  ;;  %v177_v26 = vadd.f32 %v174_v21, %v165_v25 }
 0x183   :  { %v343_v27 = vmul.f32 -1.442695, %v177_v26 }
 0x185   :  { %372 = vpow2.f32 %v343_v27 }
 0x18e   :  { %v371_v28 = vpop.eup %370 }
 0x18f   :  { %v184_v29 = vadd.f32 1.0, %v371_v28 }
 0x191   :  { %374 = vrcp.f32 %v184_v29 }
 0x192   :  { %v373_v30 = vpop.eup %372 }
 0x193   :  { %v185_v31 = vadd.f32 1.0, %v373_v30 }
 0x195   :  { %376 = vrcp.f32 %v185_v31 }
 0x19e   :  { %v375_v36 = vpop.eup %374 }
 0x19f   :  { %v197_v38 = vrot.slane %v375_v36, %v196_v35 }
 0x1a2   :  { %v377_v37 = vpop.eup %376 }
 0x1a3   :  { %v201_v39 = vrot.slane %v377_v37, %v196_v35 }
 0x1a5   :  { %v203_v40 = vsel %vm202_vm1, %v201_v39, %v197_v38 }
 0x1a6   :  { %v206_v41 = vsel %vm205_vm2, %v203_v40, -inf }
 0x1a7   :  { %207 = vmax.xlane.f32.xlu1 %v206_v41 }
 0x230   :  { %v208_v44 = vpop.xlane.xlu1 %207 }
 0x231   :  { %v213_v45 = vrot.slane %v208_v44, %v212_v42  ;;  %v217_v46 = vrot.slane %v208_v44, %v216_v43 }
 0x233   :  { %v220_v47 = vsub.f32 %v375_v36, %v213_v45  ;;  %v221_v48 = vsub.f32 %v377_v37, %v217_v46 }
 0x235   :  { %v222_v49 = vmul.f32 1.442695, %v220_v47  ;;  %v224_v50 = vmul.f32 1.442695, %v221_v48 }
 0x237   :  { %378 = vpow2.f32 %v222_v49 }
 0x238   :  { %380 = vpow2.f32 %v224_v50 }
 0x244   :  { %v379_v51 = vpop.eup %378 }
 0x245   :  { %v381_v52 = vpop.eup %380  ;;  %229 = vperm.xlu0 %369, %v379_v51  }
 0x246   :  { %232 = vperm.xlu1 %368, %v381_v52  }
 0x2c0   :  { %v230_v53 = vpop.permute.xlu0 %229 }
 0x2c1   :  { %v233_v54 = vpop.permute.xlu1 %232  ;;  %v237_v55 = vrot.slane %v230_v53, %v196_v35 }
 0x2c2   :  { %v241_v56 = vrot.slane %v233_v54, %v196_v35 }
 0x2c4   :  { %v242_v57 = vsel %vm202_vm1, %v241_v56, %v237_v55 }
 0x2c5   :  { %v244_v58 = vsel %vm205_vm2, %v242_v57, 0.0 }
 0x2c6   :  { %245 = vadd.xlane.f32.xlu0 %v244_v58 }
 0x34f   :  { %v246_v59 = vpop.xlane.xlu0 %245 }
 0x350   :  { %382 = vrcp.f32 %v246_v59 }
 0x35d   :  { %v383_v60 = vpop.eup %382 }
 0x35e   :  { %v248_v61 = vmul.f32 %v383_v60, %v246_v59 }
 0x360   :  { %v249_v62 = vsub.f32 2.0, %v248_v61 }
 0x362   :  { %v250_v63 = vmul.f32 %v383_v60, %v249_v62 }
 0x364   :  { %v255_v0 = vrot.slane %v250_v63, %v212_v42  ;;  %v259_v1 = vrot.slane %v250_v63, %v216_v43 }
 0x366   :  { %v262_v2 = vmul.f32 %v379_v51, %v255_v0  ;;  %v263_v4 = vmul.f32 %v381_v52, %v259_v1 }
 0x368   :  { %266 = vperm.xlu1 %368, %v262_v2  }
 0x36c   :  { %271 = vperm.xlu1 %368, %v263_v4  }
 0x3e3   :  { %v267_v5 = vpop.permute.xlu1 %266 }
 0x3e4   :  { %v274_v7 = vmul.f32 %v267_v5, %v523_v3  ;;  %v299_v11 = vrot.slane %v267_v5, %v196_v35 }
 0x3e6   :  { %v276_v8 = vsel %vm67_vm0, %v274_v7, 0.0 }
 0x3e7   :  { %v277_v9 = vrot.slane %v276_v8, 4  ;;  %v272_v10 = vpop.permute.xlu1 %271 }
 0x3e8   :  { %v275_v12 = vmul.f32 %v272_v10, %v527_v6  ;;  %v303_v13 = vrot.slane %v272_v10, %v196_v35 }
 0x3e9   :  { %v278_v14 = vadd.f32 %v277_v9, %v276_v8 }
 0x3ea   :  { %v283_v15 = vsel %vm67_vm0, %v275_v12, 0.0  ;;  %v304_v16 = vsel %vm202_vm1, %v303_v13, %v299_v11 }
 0x3eb   :  { %v279_v17 = vrot.slane %v278_v14, 2  ;;  %v284_v18 = vrot.slane %v283_v15, 4  ;;  %306 = vst.msk [vmem:[#allocation9] sm:$0x3] %vm205_vm2, %v304_v16 }
 0x3ec   :  { %435 = shalt.err (!%p432_p0)
}
 0x3ed   :  { %326 = dma.vmem_to_hbm [thread:$0]  %s324_s3, 32, %s562_s6, [#allocation10]   ;;  %v280_v3 = vadd.f32 %v279_v17, %v278_v14  ;;  %v285_v6 = vadd.f32 %v284_v18, %v283_v15  ;;  %vm294_vm3 = vcmask 254976  }
 0x3ee   :  { %s478_s15 = smov [#allocation8]  }
 0x3ef   :  { %v286_v19 = vrot.slane %v285_v6, 2  ;;  %v281_v20 = vrot.slane %v280_v3, 1  ;;  %s313_s16 = sshll.u32 %s478_s15, 4  ;;  %s314_s16 = int_to_ptr.vmem [resolvable:$true] %s313_s16 }
 0x3f0   :  { %s444_s17 = scalar_lea.vmem %s314_s16, 32  ;;  %p449_p2 = scmp.lt.s32.totalorder %s314_s16, %s314_s16 }
 0x3f1   :  { %v287_v21 = vadd.f32 %v286_v19, %v285_v6  ;;  %v282_v24 = vadd.f32 %v281_v20, %v280_v3  ;;  %p445_p1 = scmp.ne.s32.totalorder %s314_s16, %s444_s17  ;;  %p450_p3 = scmp.lt.s32.totalorder %s444_s17, %s444_s17 }
 0x3f3   :  { %v288_v22 = vrot.slane %v287_v21, 1  ;;  %p451_p4 = por %p450_p3, %p449_p2 }
 0x3f5   :  { %v289_v23 = vadd.f32 %v288_v22, %v287_v21  ;;  %p452_p5 = pnand %p451_p4, %p445_p1 }
 0x3f7   :  { %v292_v25 = vsel %vm202_vm1, %v289_v23, %v282_v24 }
 0x3f8   :  { %295 = vst.msk [vmem:[#allocation8] sm:$0x3] %vm294_vm3, %v292_v25 }
 0x3f9   :  { %455 = shalt.err (!%p452_p5)
}
 0x3fa   :  { %316 = dma.vmem_to_hbm [thread:$0]  %s314_s16, 32, %s561_s5, [#allocation5]  }
 0x3fb   :  { %468 = dma.done.wait [#allocation5], 32  }
 0x3fc   :  { %469 = vsyncadd [#allocation5], 4294967264 }
 0x3fd   :  { %470 = dma.done.wait [#allocation10], 32  }
 0x3fe   :  { %471 = vsyncadd [#allocation10], 4294967264 }
 0x3ff   :  { %333 = vsyncpa [#allocation4], 1 }
 0x400   :  { %334 = vsyncpa [#allocation7], 1 }
 0x401   :  { %335 = vsyncpa [#allocation5], 1 }
 0x402   :  { %336 = vsyncpa [#allocation10], 1 }

</bundles_post_ra>
